<compile_context>
chip_gen: v6e
topology: v6e:2x2x1
jax: 0.10.0
libtpu: 0.0.40
codegen_flags: <defaults>
</compile_context>

<pallas_src>
import functools

import jax
import jax.numpy as jnp
from jax.experimental import pallas as pl
from jax.experimental.pallas import tpu as pltpu


def _fused_kernel(e1_ref, e2_ref, w2p_ref, w1p_ref, bf_ref, out_ref):
    # Sum-of-two-dots: no concat, no zero-padded contraction columns.
    y = jnp.dot(e2_ref[...], w2p_ref[...],
                preferred_element_type=jnp.float32,
                precision=jax.lax.Precision.HIGHEST)
    y = y + jnp.dot(e1_ref[...], w1p_ref[...],
                    preferred_element_type=jnp.float32,
                    precision=jax.lax.Precision.HIGHEST)
    y = y + bf_ref[...]                       # (tile_b, 2D) + (1, 2D) broadcast
    out_ref[...] = jnp.tanh(y).astype(out_ref.dtype)


def prepare_fused_params(w1, b1, w2, b2):
    """One-time (init-time) weight prep — NOT in the per-call hot path.

    w1, w2: (D, D) PyTorch-layout (out_features, in_features). b1, b2: (D,).
    Returns:
      w2_pad: (D, 2D) = [W2^T | 0]   (contributes to lanes [0, D)   -> out_a)
      w1_pad: (D, 2D) = [0 | W1^T]   (contributes to lanes [D, 2D)  -> out_b)
      b_fused: (1, 2D) = [b2 | b1]
    """
    D = w1.shape[0]
    w2_pad = jnp.zeros((D, 2 * D), dtype=w2.dtype).at[:, :D].set(jnp.transpose(w2))
    w1_pad = jnp.zeros((D, 2 * D), dtype=w1.dtype).at[:, D:].set(jnp.transpose(w1))
    b_fused = jnp.concatenate([b2, b1]).reshape(1, 2 * D)
    return w2_pad, w1_pad, b_fused


def _pick_tile_b(B):
    """Batch tile: single step at small B; at large B, big tiles (HBM
    roofline) but >=2 grid steps so the parallel axis can shard across
    v7x's two TensorCores."""
    if B <= 1024:
        return B
    tile_b = min(2048, pl.cdiv(B, 2))
    return ((tile_b + 7) // 8) * 8  # sublane alignment


@functools.partial(jax.jit, static_argnames=())
def uai_disentangler_forward(e1, e2, w2_pad, w1_pad, b_fused):
    """Hot path: a single pallas_call. e1, e2: (B, D) f32."""
    B, D = e1.shape
    D2 = 2 * D

    tile_b = _pick_tile_b(B)
    grid = (pl.cdiv(B, tile_b),)
    # NOTE: ragged last batch tile (B % tile_b != 0) is only ragged along M;
    # the K=D contraction is never ragged and OOB output rows are masked.

    cost = pl.CostEstimate(
        flops=2 * 2 * B * D * D2,               # two (B,D)x(D,2D) dots
        transcendentals=B * D2,                 # tanh
        bytes_accessed=(2 * B * D + 2 * D * D2 + D2 + B * D2) * 4,
    )

    out = pl.pallas_call(
        _fused_kernel,
        out_shape=jax.ShapeDtypeStruct((B, D2), e1.dtype),
        grid=grid,
        in_specs=[
            pl.BlockSpec((tile_b, D), lambda i: (i, 0)),   # e1
            pl.BlockSpec((tile_b, D), lambda i: (i, 0)),   # e2
            pl.BlockSpec((D, D2), lambda i: (0, 0)),       # [W2^T | 0]  (resident)
            pl.BlockSpec((D, D2), lambda i: (0, 0)),       # [0 | W1^T]  (resident)
            pl.BlockSpec((1, D2), lambda i: (0, 0)),       # [b2 | b1]   (resident)
        ],
        out_specs=pl.BlockSpec((tile_b, D2), lambda i: (i, 0)),
        compiler_params=pltpu.CompilerParams(
            dimension_semantics=("parallel",),
        ),
        cost_estimate=cost,
    )(e1, e2, w2_pad, w1_pad, b_fused)

    # Lane-dense (B, 2D) slab -> the two module outputs (layout plumbing only).
    out_a = out[:, :D]   # tanh(e2 @ W2^T + b2)
    out_b = out[:, D:]   # tanh(e1 @ W1^T + b1)
    return out_a, out_b


if __name__ == "__main__":
    LATENT_DIM = 64
    BATCH = 8

    key = jax.random.PRNGKey(0)
    k_e1, k_e2, k_w1, k_b1, k_w2, k_b2 = jax.random.split(key, 6)

    # Deterministic parameter init (mimics nn.Linear uniform(-1/sqrt(fan_in), +)).
    bound = 1.0 / jnp.sqrt(LATENT_DIM)
    w1 = jax.random.uniform(k_w1, (LATENT_DIM, LATENT_DIM), jnp.float32, -bound, bound)
    b1 = jax.random.uniform(k_b1, (LATENT_DIM,), jnp.float32, -bound, bound)
    w2 = jax.random.uniform(k_w2, (LATENT_DIM, LATENT_DIM), jnp.float32, -bound, bound)
    b2 = jax.random.uniform(k_b2, (LATENT_DIM,), jnp.float32, -bound, bound)

    e1 = jax.random.normal(k_e1, (BATCH, LATENT_DIM), jnp.float32)
    e2 = jax.random.normal(k_e2, (BATCH, LATENT_DIM), jnp.float32)

    # One-time weight prep (outside the hot path).
    w2_pad, w1_pad, b_fused = prepare_fused_params(w1, b1, w2, b2)
    jax.block_until_ready((w2_pad, w1_pad, b_fused))

    out_a, out_b = uai_disentangler_forward(e1, e2, w2_pad, w1_pad, b_fused)
    jax.block_until_ready((out_a, out_b))

    # Pure-JAX reference (same HIGHEST-precision matmuls as the kernel).
    hi = jax.lax.Precision.HIGHEST
    ref_a = jnp.tanh(jnp.dot(e2, w2.T, precision=hi) + b2)
    ref_b = jnp.tanh(jnp.dot(e1, w1.T, precision=hi) + b1)
    assert jnp.allclose(out_a, ref_a, atol=1e-5), "out_a mismatch"
    assert jnp.allclose(out_b, ref_b, atol=1e-5), "out_b mismatch"

    print("KERNEL_OK")
</pallas_src>

<mosaic_0001>
module attributes {stable_mosaic.version = 11 : i64} {
  func.func @_fused_kernel(%arg0: i32, %arg1: memref<8x64xf32, #tpu.memory_space<vmem>>, %arg2: memref<8x64xf32, #tpu.memory_space<vmem>>, %arg3: memref<64x128xf32, #tpu.memory_space<vmem>>, %arg4: memref<64x128xf32, #tpu.memory_space<vmem>>, %arg5: memref<1x128xf32, #tpu.memory_space<vmem>>, %arg6: memref<8x128xf32, #tpu.memory_space<vmem>>) attributes {dimension_semantics = [#tpu.dimension_semantics<parallel>], iteration_bounds = array<i64: 1>, scalar_prefetch = 0 : i64, scratch_operands = 0 : i64, tpu.core_type = #tpu.core_type<tc>, window_params = [{transform_indices = @transform_0, window_bounds = array<i64: 8, 64>}, {transform_indices = @transform_1, window_bounds = array<i64: 8, 64>}, {pipeline_mode = #tpu.pipeline_mode<synchronous>, transform_indices = @transform_2, window_bounds = array<i64: 64, 128>}, {pipeline_mode = #tpu.pipeline_mode<synchronous>, transform_indices = @transform_3, window_bounds = array<i64: 64, 128>}, {pipeline_mode = #tpu.pipeline_mode<synchronous>, transform_indices = @transform_4, window_bounds = array<i64: 1, 128>}, {transform_indices = @transform_5, window_bounds = array<i64: 8, 128>}]} {
    %c0 = arith.constant 0 : index
    %c0_0 = arith.constant 0 : index
    %0 = vector.load %arg2[%c0, %c0_0] : memref<8x64xf32, #tpu.memory_space<vmem>>, vector<8x64xf32>
    %c0_1 = arith.constant 0 : index
    %c0_2 = arith.constant 0 : index
    %1 = vector.load %arg3[%c0_1, %c0_2] : memref<64x128xf32, #tpu.memory_space<vmem>>, vector<64x128xf32>
    %cst = arith.constant dense<0.000000e+00> : vector<8x128xf32>
    %2 = tpu.matmul %0, %1, %cst {dimension_numbers = #tpu.dot_dimension_numbers<[1], [0], [0], [1], [0, 0, 1, 1], [], []>, precision = #tpu.contract_precision<fp32>} : vector<8x64xf32>, vector<64x128xf32>, vector<8x128xf32> -> vector<8x128xf32>
    %c0_3 = arith.constant 0 : index
    %c0_4 = arith.constant 0 : index
    %3 = vector.load %arg1[%c0_3, %c0_4] : memref<8x64xf32, #tpu.memory_space<vmem>>, vector<8x64xf32>
    %c0_5 = arith.constant 0 : index
    %c0_6 = arith.constant 0 : index
    %4 = vector.load %arg4[%c0_5, %c0_6] : memref<64x128xf32, #tpu.memory_space<vmem>>, vector<64x128xf32>
    %cst_7 = arith.constant dense<0.000000e+00> : vector<8x128xf32>
    %5 = tpu.matmul %3, %4, %cst_7 {dimension_numbers = #tpu.dot_dimension_numbers<[1], [0], [0], [1], [0, 0, 1, 1], [], []>, precision = #tpu.contract_precision<fp32>} : vector<8x64xf32>, vector<64x128xf32>, vector<8x128xf32> -> vector<8x128xf32>
    %6 = arith.addf %2, %5 : vector<8x128xf32>
    %c0_8 = arith.constant 0 : index
    %c0_9 = arith.constant 0 : index
    %7 = vector.load %arg5[%c0_8, %c0_9] : memref<1x128xf32, #tpu.memory_space<vmem>>, vector<1x128xf32>
    %8 = vector.broadcast %7 : vector<1x128xf32> to vector<8x128xf32>
    %9 = arith.addf %6, %8 : vector<8x128xf32>
    %10 = math.tanh %9 : vector<8x128xf32>
    %c0_10 = arith.constant 0 : index
    %c0_11 = arith.constant 0 : index
    %11 = vector.load %arg6[%c0_10, %c0_11] : memref<8x128xf32, #tpu.memory_space<vmem>>, vector<8x128xf32>
    tpu.vector_store %arg6[%c0_10, %c0_11], %10 {strides = array<i32>} : memref<8x128xf32, #tpu.memory_space<vmem>>, vector<8x128xf32>,
    return
  }
  func.func @transform_0(%arg0: i32) -> (i32, i32) {
    %c0_i32 = arith.constant 0 : i32
    %c0_i32_0 = arith.constant 0 : i32
    return %arg0, %c0_i32 : i32, i32
  }
  func.func @transform_1(%arg0: i32) -> (i32, i32) {
    %c0_i32 = arith.constant 0 : i32
    %c0_i32_0 = arith.constant 0 : i32
    return %arg0, %c0_i32 : i32, i32
  }
  func.func @transform_2(%arg0: i32) -> (i32, i32) {
    %c0_i32 = arith.constant 0 : i32
    %c0_i32_0 = arith.constant 0 : i32
    %c0_i32_1 = arith.constant 0 : i32
    return %c0_i32, %c0_i32_0 : i32, i32
  }
  func.func @transform_3(%arg0: i32) -> (i32, i32) {
    %c0_i32 = arith.constant 0 : i32
    %c0_i32_0 = arith.constant 0 : i32
    %c0_i32_1 = arith.constant 0 : i32
    return %c0_i32, %c0_i32_0 : i32, i32
  }
  func.func @transform_4(%arg0: i32) -> (i32, i32) {
    %c0_i32 = arith.constant 0 : i32
    %c0_i32_0 = arith.constant 0 : i32
    %c0_i32_1 = arith.constant 0 : i32
    return %c0_i32, %c0_i32_0 : i32, i32
  }
  func.func @transform_5(%arg0: i32) -> (i32, i32) {
    %c0_i32 = arith.constant 0 : i32
    %c0_i32_0 = arith.constant 0 : i32
    return %arg0, %c0_i32 : i32, i32
  }
}

</mosaic_0001>

<bundles_post_ra>
// kernel: uai_disentangler_forward.1
= control target key start
LH: loop header
LB: loop body
LE: loop exit
PB: predicated region body
PF: predicated region fallthrough
CT: control target
= control target key end

     0   :  { %10 = vsyncpa [#allocation3], 0  ;;  %s2068_s0 = inlined_call_operand.hbm [shape: f32[8,64], index: 0, kind: input, shape index: {}]   ;;  %s2069_s1 = inlined_call_operand.hbm [shape: f32[8,64], index: 1, kind: input, shape index: {}]   ;;  %s2070_s2 = inlined_call_operand.hbm [shape: f32[64,128], index: 2, kind: input, shape index: {}]   ;;  %s2071_s3 = inlined_call_operand.hbm [shape: f32[64,128], index: 3, kind: input, shape index: {}]   ;;  %s2072_s4 = inlined_call_operand.vmem [shape: f32[1,128], index: 4, kind: input, shape index: {}]   ;;  %s2073_s5 = inlined_call_operand.vmem [shape: f32[8,128], index: 5, kind: output, shape index: {}]  }
   0x1   :  { %11 = vsyncpa [#allocation5], 0 }
   0x2   :  { %12 = vsyncpa [#allocation8], 0  ;;  %s1620_s18 = smov [#allocation4]   ;;  %s1621_s20 = smov [#allocation2]  }
   0x3   :  { %s29_s19 = sshll.u32 %s1620_s18, 4  ;;  %s19_s21 = sshll.u32 %s1621_s20, 4  ;;  %s30_s19 = int_to_ptr.vmem [resolvable:$true] %s29_s19  ;;  %s20_s21 = int_to_ptr.vmem [resolvable:$true] %s19_s21 }
   0x4   :  { %s1542_s22 = scalar_lea.vmem %s30_s19, 128  ;;  %p1547_p1 = scmp.lt.s32.totalorder %s30_s19, %s30_s19 }
   0x5   :  { %p1543_p0 = scmp.ne.s32.totalorder %s30_s19, %s1542_s22  ;;  %p1548_p2 = scmp.lt.s32.totalorder %s1542_s22, %s1542_s22 }
   0x7   :  { %p1549_p3 = por %p1548_p2, %p1547_p1 }
   0x9   :  { %p1550_p4 = pnand %p1549_p3, %p1543_p0 }
   0xb   :  { %1553 = shalt.err (!%p1550_p4)
}
   0xc   :  { %32 = dma.hbm_to_vmem [thread:$0]  %s2069_s1, 128, %s30_s19, [#allocation5]  }
   0xd   :  { %s1562_s25 = scalar_lea.vmem %s20_s21, 128  ;;  %p1567_p6 = scmp.lt.s32.totalorder %s20_s21, %s20_s21 }
   0xe   :  { %p1563_p5 = scmp.ne.s32.totalorder %s20_s21, %s1562_s25  ;;  %p1568_p7 = scmp.lt.s32.totalorder %s1562_s25, %s1562_s25 }
  0x10   :  { %p1569_p8 = por %p1568_p7, %p1567_p6 }
  0x12   :  { %p1570_p9 = pnand %p1569_p8, %p1563_p5 }
  0x14   :  { %1573 = shalt.err (!%p1570_p9)
}
  0x15   :  { %22 = dma.hbm_to_vmem [thread:$0]  %s2068_s0, 128, %s20_s21, [#allocation3]  }
  0x16   :  { %s1622_s28 = smov [#allocation6]  }
  0x17   :  { %s38_s29 = sshll.u32 %s1622_s28, 4  ;;  %s39_s29 = int_to_ptr.vmem [resolvable:$true] %s38_s29 }
  0x18   :  { %s1582_s30 = scalar_lea.vmem %s39_s29, 1024  ;;  %p1587_p11 = scmp.lt.s32.totalorder %s39_s29, %s39_s29 }
  0x19   :  { %p1583_p10 = scmp.ne.s32.totalorder %s39_s29, %s1582_s30  ;;  %p1588_p12 = scmp.lt.s32.totalorder %s1582_s30, %s1582_s30 }
  0x1b   :  { %p1589_p13 = por %p1588_p12, %p1587_p11 }
  0x1d   :  { %p1590_p0 = pnand %p1589_p13, %p1583_p10 }
  0x1f   :  { %1593 = shalt.err (!%p1590_p0)
}
  0x20   :  { %s1623_s1 = smov 128   ;;  %s1624_s6 = smov 8  }
  0x21   :  { %44 = dma.hbm_to_vmem [thread:$0]  %s2070_s2, 1024, %s39_s29, [#allocation5], %s1623_s1, %s1623_s1, %s1624_s6  }
  0x22   :  { %s1625_s9 = smov [#allocation7]  }
  0x23   :  { %s50_s10 = sshll.u32 %s1625_s9, 4  ;;  %s51_s10 = int_to_ptr.vmem [resolvable:$true] %s50_s10 }
  0x24   :  { %s1602_s0 = scalar_lea.vmem %s51_s10, 1024  ;;  %p1607_p2 = scmp.lt.s32.totalorder %s51_s10, %s51_s10 }
  0x25   :  { %p1603_p1 = scmp.ne.s32.totalorder %s51_s10, %s1602_s0  ;;  %p1608_p3 = scmp.lt.s32.totalorder %s1602_s0, %s1602_s0 }
  0x27   :  { %p1609_p4 = por %p1608_p3, %p1607_p2 }
  0x29   :  { %p1610_p5 = pnand %p1609_p4, %p1603_p1 }
  0x2b   :  { %1613 = shalt.err (!%p1610_p5)
}
  0x2c   :  { %56 = dma.hbm_to_vmem [thread:$0]  %s2071_s3, 1024, %s51_s10, [#allocation8], %s1623_s1, %s1623_s1, %s1624_s6  }
  0x2d   :  { %1614 = dma.done.wait [#allocation3], 128  }
  0x2e   :  { %1615 = vsyncadd [#allocation3], 4294967168 }
  0x2f   :  { %1616 = dma.done.wait [#allocation5], 1152  }
  0x30   :  { %1617 = vsyncadd [#allocation5], 4294966144 }
  0x31   :  { %1618 = dma.done.wait [#allocation8], 1024  }
  0x32   :  { %1619 = vsyncadd [#allocation8], 4294966272  ;;  %v1626_v0 = vmov 0.0   ;;  %vm1627_vm0 = vmmov 0   ;;  %v88_v1 = vld [vmem:[#allocation7 + $0x38] sm:$0xff]  ;;  %v87_v2 = vld [vmem:[#allocation7 + $0x30] sm:$0xff] }
  0x33   :  { %1296 = vmatprep.subr.mxu0 %v1626_v0  ;;  %1315 = vmatprep.subr.mxu1 %v1626_v0  ;;  %v86_v3 = vld [vmem:[#allocation7 + $0x28] sm:$0xff]  ;;  %vm89_vm1 = vcmask 523264   ;;  %v1676_v4 = vand.u32 4294901760, %v88_v1  ;;  %v1678_v5 = vand.u32 4294901760, %v87_v2  ;;  %v85_v7 = vld [vmem:[#allocation7 + $0x20] sm:$0xff]  ;;  %v84_v8 = vld [vmem:[#allocation7 + $0x18] sm:$0xff] }
  0x34   :  { %1312 = vmatprep.mubr.msk.f32.mxu0 %vm1627_vm0, %v1626_v0  ;;  %1331 = vmatprep.mubr.msk.f32.mxu1 %vm1627_vm0, %v1626_v0  ;;  %v1680_v6 = vand.u32 4294901760, %v86_v3  ;;  %v83_v9 = vld [vmem:[#allocation7 + $0x10] sm:$0xff]  ;;  %v1682_v10 = vand.u32 4294901760, %v85_v7  ;;  %v1684_v11 = vand.u32 4294901760, %v84_v8  ;;  %v82_v13 = vld [vmem:[#allocation7 + $0x8] sm:$0xff]  ;;  %v81_v17 = vld [vmem:[#allocation7] sm:$0xff] }
  0x35   :  { %v1686_v12 = vand.u32 4294901760, %v83_v9  ;;  %1297 = vmatpush3.msra.mxu0 %v1676_v4  ;;  %v1690_v14 = vsub.f32 %v88_v1, %v1676_v4  ;;  %v1693_v15 = vsub.f32 %v87_v2, %v1678_v5  ;;  %v80_v18 = vld [vmem:[#allocation2] sm:$0xff]  ;;  %v1699_v19 = vand.u32 4294901760, %v82_v13  ;;  %v79_v56 = vld [vmem:[#allocation6 + $0x38] sm:$0xff]  ;;  %v77_v60 = vld [vmem:[#allocation6 + $0x28] sm:$0xff] }
  0x36   :  { %v1696_v16 = vsub.f32 %v86_v3, %v1680_v6  ;;  %1298 = vmatprep.subr.mxu0 %v1626_v0  ;;  %v1702_v20 = vsub.f32 %v85_v7, %v1682_v10  ;;  %v91_v21 = vsel %vm89_vm1, %v80_v18, 0  ;;  %v1712_v26 = vand.u32 4294901760, %v81_v17  ;;  %v78_v57 = vld [vmem:[#allocation6 + $0x30] sm:$0xff]  ;;  %v71_v59 = vld [vmem:[#allocation4] sm:$0xff]  ;;  %v76_v2 = vld [vmem:[#allocation6 + $0x20] sm:$0xff] }
  0x37   :  { %1299 = vmatpush3.msra.mxu0 %v1678_v5  ;;  %v195_v22 = vand.u32 4294901760, %v1690_v14  ;;  %v202_v23 = vand.u32 4294901760, %v1693_v15  ;;  %v1709_v25 = vand.u32 4294901760, %v91_v21  ;;  %v1716_v28 = vsub.f32 %v84_v8, %v1684_v11 }
  0x38   :  { %v209_v24 = vand.u32 4294901760, %v1696_v16  ;;  %1300 = vmatprep.subr.mxu0 %v1626_v0  ;;  %v216_v27 = vand.u32 4294901760, %v1702_v20  ;;  %v1719_v29 = vsub.f32 %v83_v9, %v1686_v12  ;;  %v1740_v36 = vsub.f32 %v82_v13, %v1699_v19  ;;  %v74_v9 = vld [vmem:[#allocation6 + $0x10] sm:$0xff] }
  0x39   :  { %1301 = vmatpush3.msra.mxu0 %v1680_v6  ;;  %v196_v30 = vsub.f32 %v1690_v14, %v195_v22  ;;  %v203_v31 = vsub.f32 %v1693_v15, %v202_v23  ;;  %v1732_v33 = vsub.f32 %v91_v21, %v1709_v25  ;;  %v223_v35 = vand.u32 4294901760, %v1716_v28 }
  0x3a   :  { %v210_v32 = vsub.f32 %v1696_v16, %v209_v24  ;;  %1302 = vmatprep.subr.mxu0 %v1626_v0  ;;  %v217_v34 = vsub.f32 %v1702_v20, %v216_v27  ;;  %v230_v40 = vand.u32 4294901760, %v1719_v29  ;;  %v237_v44 = vand.u32 4294901760, %v1740_v36 }
  0x3b   :  { %1303 = vmatpush3.msra.mxu0 %v1682_v10  ;;  %v197_v37 = vand.u32 4294901760, %v196_v30  ;;  %v204_v38 = vand.u32 4294901760, %v203_v31  ;;  %v168_v39 = vand.u32 4294901760, %v1732_v33  ;;  %v224_v43 = vsub.f32 %v1716_v28, %v223_v35 }
  0x3c   :  { %1304 = vmatprep.subr.mxu0 %v1626_v0  ;;  %v211_v41 = vand.u32 4294901760, %v210_v32  ;;  %v1755_v45 = vsub.f32 %v81_v17, %v1712_v26  ;;  %v218_v46 = vand.u32 4294901760, %v217_v34  ;;  %v231_v47 = vsub.f32 %v1719_v29, %v230_v40 }
  0x3d   :  { %1305 = vmatpush3.msra.mxu0 %v1684_v11  ;;  %1316 = vmatpush3.msra.mxu1 %v197_v37  ;;  %v169_v42 = vsub.f32 %v1732_v33, %v168_v39  ;;  %v225_v50 = vand.u32 4294901760, %v224_v43  ;;  %v238_v51 = vsub.f32 %v1740_v36, %v237_v44  ;;  %v1832_v58 = vand.u32 4294901760, %v79_v56 }
  0x3e   :  { %1306 = vmatprep.subr.mxu0 %v1626_v0  ;;  %1317 = vmatprep.subr.mxu1 %v1626_v0  ;;  %v244_v48 = vand.u32 4294901760, %v1755_v45  ;;  %v232_v52 = vand.u32 4294901760, %v231_v47  ;;  %v1839_v61 = vand.u32 4294901760, %v78_v57  ;;  %v631_v62 = vsel %vm89_vm1, %v71_v59, 0 }
  0x3f   :  { %1307 = vmatpush3.msra.mxu0 %v1686_v12  ;;  %1318 = vmatpush3.msra.mxu1 %v204_v38  ;;  %v170_v49 = vand.u32 4294901760, %v169_v42  ;;  %v239_v54 = vand.u32 4294901760, %v238_v51  ;;  %v1848_v63 = vsub.f32 %v79_v56, %v1832_v58  ;;  %v1850_v1 = vand.u32 4294901760, %v77_v60 }
  0x40   :  { %1308 = vmatprep.subr.mxu0 %v1626_v0  ;;  %1319 = vmatprep.subr.mxu1 %v1626_v0  ;;  %v245_v53 = vsub.f32 %v1755_v45, %v244_v48  ;;  %v1858_v3 = vsub.f32 %v78_v57, %v1839_v61  ;;  %v1864_v7 = vand.u32 4294901760, %v76_v2  ;;  %v1886_v17 = vand.u32 4294901760, %v74_v9 }
  0x41   :  { %1309 = vmatpush3.msra.mxu0 %v1699_v19  ;;  %1320 = vmatpush3.msra.mxu1 %v211_v41  ;;  %v735_v8 = vand.u32 4294901760, %v1848_v63 }
  0x42   :  { %1310 = vmatprep.subr.mxu0 %v1626_v0  ;;  %1321 = vmatprep.subr.mxu1 %v1626_v0  ;;  %v246_v55 = vand.u32 4294901760, %v245_v53 }
  0x43   :  { %1311 = vmatpush3.msra.mxu0 %v1712_v26  ;;  %1322 = vmatpush3.msra.mxu1 %v218_v46  ;;  %v736_v18 = vsub.f32 %v1848_v63, %v735_v8 }
  0x44   :  { %1323 = vmatprep.subr.mxu1 %v1626_v0  ;;  %1334 = vmatprep.subr.mxu0 %v1626_v0 }
  0x45   :  { %1313 = vmatmul.mubr.f32.vlgmr.msra.gmra.mxu0 %v170_v49  ;;  %1324 = vmatpush3.msra.mxu1 %v225_v50 }
  0x46   :  { %1335 = vmatpush3.msra.mxu0 %v1690_v14  ;;  %1325 = vmatprep.subr.mxu1 %v1626_v0  ;;  %v742_v14 = vand.u32 4294901760, %v1858_v3 }
  0x47   :  { %1336 = vmatprep.subr.mxu0 %v1626_v0  ;;  %1326 = vmatpush3.msra.mxu1 %v232_v52 }
  0x48   :  { %1337 = vmatpush3.msra.mxu0 %v1693_v15  ;;  %1327 = vmatprep.subr.mxu1 %v1626_v0  ;;  %v73_v15 = vld [vmem:[#allocation6 + $0x8] sm:$0xff] }
  0x49   :  { %1338 = vmatprep.subr.mxu0 %v1626_v0  ;;  %1328 = vmatpush3.msra.mxu1 %v239_v54 }
  0x4a   :  { %1339 = vmatpush3.msra.mxu0 %v1696_v16  ;;  %1329 = vmatprep.subr.mxu1 %v1626_v0  ;;  %v1884_v16 = vsub.f32 %v76_v2, %v1864_v7 }
  0x4b   :  { %1340 = vmatprep.subr.mxu0 %v1626_v0  ;;  %1330 = vmatpush3.msra.mxu1 %v246_v55 }
  0x4c   :  { %1341 = vmatpush3.msra.mxu0 %v1702_v20  ;;  %1332 = vmatmul.mubr.f32.vlgmr.msra.gmra.mxu1 %v1709_v25  ;;  %v72_v20 = vld [vmem:[#allocation6] sm:$0xff] }
  0x4d   :  { %1342 = vmatprep.subr.mxu0 %v1626_v0  ;;  %1353 = vmatprep.subr.mxu1 %v1626_v0 }
  0x4e   :  { %1343 = vmatpush3.msra.mxu0 %v1716_v28  ;;  %1354 = vmatpush3.msra.mxu1 %v1676_v4 }
  0x4f   :  { %1344 = vmatprep.subr.mxu0 %v1626_v0  ;;  %1355 = vmatprep.subr.mxu1 %v1626_v0 }
  0x50   :  { %1345 = vmatpush3.msra.mxu0 %v1719_v29  ;;  %1356 = vmatpush3.msra.mxu1 %v1678_v5  ;;  %v737_v29 = vand.u32 4294901760, %v736_v18 }
  0x51   :  { %1346 = vmatprep.subr.mxu0 %v1626_v0  ;;  %1357 = vmatprep.subr.mxu1 %v1626_v0 }
  0x52   :  { %1347 = vmatpush3.msra.mxu0 %v1740_v36  ;;  %1358 = vmatpush3.msra.mxu1 %v1680_v6 }
  0x53   :  { %1348 = vmatprep.subr.mxu0 %v1626_v0  ;;  %1359 = vmatprep.subr.mxu1 %v1626_v0 }
  0x54   :  { %1349 = vmatpush3.msra.mxu0 %v1755_v45  ;;  %1350 = vmatprep.mubr.msk.f32.mxu0 %vm1627_vm0, %v1626_v0 }
  0x55   :  { %1360 = vmatpush3.msra.mxu1 %v1682_v10  ;;  %1351 = vmatmul.mubr.f32.vlgmr.msra.gmra.mxu0 %v1732_v33 }
  0x56   :  { %1361 = vmatprep.subr.mxu1 %v1626_v0  ;;  %1372 = vmatprep.subr.mxu0 %v1626_v0 }
  0x57   :  { %1362 = vmatpush3.msra.mxu1 %v1684_v11  ;;  %1373 = vmatpush3.msra.mxu0 %v195_v22  ;;  %v1902_v22 = vand.u32 4294901760, %v73_v15 }
  0x58   :  { %1363 = vmatprep.subr.mxu1 %v1626_v0  ;;  %1374 = vmatprep.subr.mxu0 %v1626_v0 }
  0x59   :  { %1364 = vmatpush3.msra.mxu1 %v1686_v12  ;;  %1375 = vmatpush3.msra.mxu0 %v202_v23  ;;  %v743_v23 = vsub.f32 %v1858_v3, %v742_v14  ;;  %v1927_v30 = vsub.f32 %v73_v15, %v1902_v22 }
  0x5a   :  { %1365 = vmatprep.subr.mxu1 %v1626_v0  ;;  %1376 = vmatprep.subr.mxu0 %v1626_v0 }
  0x5b   :  { %1366 = vmatpush3.msra.mxu1 %v1699_v19  ;;  %1377 = vmatpush3.msra.mxu0 %v209_v24  ;;  %v1914_v24 = vand.u32 4294901760, %v72_v20  ;;  %v744_v32 = vand.u32 4294901760, %v743_v23  ;;  %v777_v37 = vand.u32 4294901760, %v1927_v30 }
  0x5c   :  { %1367 = vmatprep.subr.mxu1 %v1626_v0  ;;  %1378 = vmatprep.subr.mxu0 %v1626_v0 }
  0x5d   :  { %1368 = vmatpush3.msra.mxu1 %v1712_v26  ;;  %1369 = vmatprep.mubr.msk.f32.mxu1 %vm1627_vm0, %v1626_v0  ;;  %v1935_v33 = vsub.f32 %v72_v20, %v1914_v24  ;;  %v778_v43 = vsub.f32 %v1927_v30, %v777_v37 }
  0x5e   :  { %1379 = vmatpush3.msra.mxu0 %v216_v27  ;;  %1370 = vmatmul.mubr.f32.vlgmr.msra.gmra.mxu1 %v168_v39  ;;  %v756_v27 = vand.u32 4294901760, %v1884_v16 }
  0x5f   :  { %1380 = vmatprep.subr.mxu0 %v1626_v0  ;;  %1391 = vmatprep.subr.mxu1 %v1626_v0  ;;  %v784_v41 = vand.u32 4294901760, %v1935_v33  ;;  %v779_v46 = vand.u32 4294901760, %v778_v43 }
  0x60   :  { %1381 = vmatpush3.msra.mxu0 %v223_v35  ;;  %1392 = vmatpush3.msra.mxu1 %v1676_v4  ;;  %v75_v4 = vld [vmem:[#allocation6 + $0x18] sm:$0xff] }
  0x61   :  { %1382 = vmatprep.subr.mxu0 %v1626_v0  ;;  %1393 = vmatprep.subr.mxu1 %v1626_v0  ;;  %v1876_v13 = vand.u32 4294901760, %v75_v4  ;;  %v785_v45 = vsub.f32 %v1935_v33, %v784_v41 }
  0x62   :  { %1383 = vmatpush3.msra.mxu0 %v230_v40  ;;  %1394 = vmatpush3.msra.mxu1 %v1678_v5  ;;  %v1860_v5 = vand.u32 4294901760, %v631_v62 }
  0x63   :  { %1384 = vmatprep.subr.mxu0 %v1626_v0  ;;  %1395 = vmatprep.subr.mxu1 %v1626_v0  ;;  %v1900_v21 = vsub.f32 %v75_v4, %v1876_v13  ;;  %v786_v47 = vand.u32 4294901760, %v785_v45 }
  0x64   :  { %1385 = vmatpush3.msra.mxu0 %v237_v44  ;;  %1396 = vmatpush3.msra.mxu1 %v1680_v6  ;;  %v1871_v6 = vsub.f32 %v77_v60, %v1850_v1 }
  0x65   :  { %1386 = vmatprep.subr.mxu0 %v1626_v0  ;;  %1397 = vmatprep.subr.mxu1 %v1626_v0  ;;  %v763_v31 = vand.u32 4294901760, %v1900_v21 }
  0x66   :  { %1387 = vmatpush3.msra.mxu0 %v244_v48  ;;  %1388 = vmatprep.mubr.msk.f32.mxu0 %vm1627_vm0, %v1626_v0 }
  0x67   :  { %1398 = vmatpush3.msra.mxu1 %v1682_v10  ;;  %1389 = vmatmul.mubr.f32.vlgmr.msra.gmra.mxu0 %v1709_v25  ;;  %v1889_v10 = vsub.f32 %v631_v62, %v1860_v5  ;;  %v764_v36 = vsub.f32 %v1900_v21, %v763_v31 }
  0x68   :  { %1399 = vmatprep.subr.mxu1 %v1626_v0  ;;  %1410 = vmatprep.subr.mxu0 %v1626_v0 }
  0x69   :  { %1400 = vmatpush3.msra.mxu1 %v1684_v11  ;;  %1411 = vmatpush3.msra.mxu0 %v1832_v58  ;;  %v749_v11 = vand.u32 4294901760, %v1871_v6  ;;  %v708_v28 = vand.u32 4294901760, %v1889_v10  ;;  %v765_v42 = vand.u32 4294901760, %v764_v36 }
  0x6a   :  { %1401 = vmatprep.subr.mxu1 %v1626_v0  ;;  %1412 = vmatprep.subr.mxu0 %v1626_v0 }
  0x6b   :  { %1402 = vmatpush3.msra.mxu1 %v1686_v12  ;;  %1413 = vmatpush3.msra.mxu0 %v1839_v61  ;;  %v1912_v12 = vsub.f32 %v74_v9, %v1886_v17  ;;  %v709_v34 = vsub.f32 %v1889_v10, %v708_v28 }
  0x6c   :  { %1403 = vmatprep.subr.mxu1 %v1626_v0  ;;  %1414 = vmatprep.subr.mxu0 %v1626_v0 }
  0x6d   :  { %1404 = vmatpush3.msra.mxu1 %v1699_v19  ;;  %1415 = vmatpush3.msra.mxu0 %v1850_v1  ;;  %v750_v19 = vsub.f32 %v1871_v6, %v749_v11  ;;  %v770_v35 = vand.u32 4294901760, %v1912_v12  ;;  %v710_v39 = vand.u32 4294901760, %v709_v34 }
  0x6e   :  { %1405 = vmatprep.subr.mxu1 %v1626_v0  ;;  %1416 = vmatprep.subr.mxu0 %v1626_v0 }
  0x6f   :  { %1406 = vmatpush3.msra.mxu1 %v1712_v26  ;;  %1407 = vmatprep.mubr.msk.f32.mxu1 %vm1627_vm0, %v1626_v0  ;;  %v757_v26 = vsub.f32 %v1884_v16, %v756_v27  ;;  %v771_v40 = vsub.f32 %v1912_v12, %v770_v35 }
  0x70   :  { %1417 = vmatpush3.msra.mxu0 %v1864_v7  ;;  %1408 = vmatmul.mubr.f32.vlgmr.msra.gmra.mxu1 %v1709_v25  ;;  %v751_v25 = vand.u32 4294901760, %v750_v19 }
  0x71   :  { %1418 = vmatprep.subr.mxu0 %v1626_v0  ;;  %1429 = vmatprep.subr.mxu1 %v1626_v0  ;;  %v758_v38 = vand.u32 4294901760, %v757_v26  ;;  %v772_v44 = vand.u32 4294901760, %v771_v40 }
  0x72   :  { %1419 = vmatpush3.msra.mxu0 %v1876_v13  ;;  %1430 = vmatpush3.msra.mxu1 %v737_v29 }
  0x73   :  { %1420 = vmatprep.subr.mxu0 %v1626_v0  ;;  %1431 = vmatprep.subr.mxu1 %v1626_v0 }
  0x74   :  { %1421 = vmatpush3.msra.mxu0 %v1886_v17  ;;  %1432 = vmatpush3.msra.mxu1 %v744_v32 }
  0x75   :  { %1422 = vmatprep.subr.mxu0 %v1626_v0  ;;  %1433 = vmatprep.subr.mxu1 %v1626_v0 }
  0x76   :  { %1423 = vmatpush3.msra.mxu0 %v1902_v22  ;;  %1434 = vmatpush3.msra.mxu1 %v751_v25 }
  0x77   :  { %1424 = vmatprep.subr.mxu0 %v1626_v0  ;;  %1435 = vmatprep.subr.mxu1 %v1626_v0 }
  0x78   :  { %1425 = vmatpush3.msra.mxu0 %v1914_v24  ;;  %1426 = vmatprep.mubr.msk.f32.mxu0 %vm1627_vm0, %v1626_v0 }
  0x79   :  { %1436 = vmatpush3.msra.mxu1 %v758_v38  ;;  %1427 = vmatmul.mubr.f32.vlgmr.msra.gmra.mxu0 %v710_v39 }
  0x7a   :  { %1437 = vmatprep.subr.mxu1 %v1626_v0  ;;  %1448 = vmatprep.subr.mxu0 %v1626_v0 }
  0x7b   :  { %1438 = vmatpush3.msra.mxu1 %v765_v42  ;;  %1449 = vmatpush3.msra.mxu0 %v1848_v63 }
  0x7c   :  { %1439 = vmatprep.subr.mxu1 %v1626_v0  ;;  %1450 = vmatprep.subr.mxu0 %v1626_v0 }
  0x7d   :  { %1440 = vmatpush3.msra.mxu1 %v772_v44  ;;  %1451 = vmatpush3.msra.mxu0 %v1858_v3 }
  0x7e   :  { %1441 = vmatprep.subr.mxu1 %v1626_v0  ;;  %1452 = vmatprep.subr.mxu0 %v1626_v0 }
  0x7f   :  { %1442 = vmatpush3.msra.mxu1 %v779_v46  ;;  %1453 = vmatpush3.msra.mxu0 %v1871_v6 }
  0x80   :  { %1443 = vmatprep.subr.mxu1 %v1626_v0  ;;  %1454 = vmatprep.subr.mxu0 %v1626_v0 }
  0x81   :  { %1444 = vmatpush3.msra.mxu1 %v786_v47  ;;  %1445 = vmatprep.mubr.msk.f32.mxu1 %vm1627_vm0, %v1626_v0 }
  0x82   :  { %1455 = vmatpush3.msra.mxu0 %v1884_v16  ;;  %1446 = vmatmul.mubr.f32.vlgmr.msra.gmra.mxu1 %v1860_v5 }
  0x83   :  { %1456 = vmatprep.subr.mxu0 %v1626_v0  ;;  %1467 = vmatprep.subr.mxu1 %v1626_v0 }
  0x84   :  { %1457 = vmatpush3.msra.mxu0 %v1900_v21  ;;  %1468 = vmatpush3.msra.mxu1 %v1832_v58 }
  0x85   :  { %1458 = vmatprep.subr.mxu0 %v1626_v0  ;;  %1469 = vmatprep.subr.mxu1 %v1626_v0 }
  0x86   :  { %1459 = vmatpush3.msra.mxu0 %v1912_v12  ;;  %1470 = vmatpush3.msra.mxu1 %v1839_v61 }
  0x87   :  { %1460 = vmatprep.subr.mxu0 %v1626_v0  ;;  %1471 = vmatprep.subr.mxu1 %v1626_v0 }
  0x88   :  { %1461 = vmatpush3.msra.mxu0 %v1927_v30  ;;  %1472 = vmatpush3.msra.mxu1 %v1850_v1 }
  0x89   :  { %1462 = vmatprep.subr.mxu0 %v1626_v0  ;;  %1473 = vmatprep.subr.mxu1 %v1626_v0 }
  0x8a   :  { %1463 = vmatpush3.msra.mxu0 %v1935_v33  ;;  %1464 = vmatprep.mubr.msk.f32.mxu0 %vm1627_vm0, %v1626_v0 }
  0x8b   :  { %1474 = vmatpush3.msra.mxu1 %v1864_v7  ;;  %1465 = vmatmul.mubr.f32.vlgmr.msra.gmra.mxu0 %v1889_v10 }
  0x8c   :  { %1475 = vmatprep.subr.mxu1 %v1626_v0  ;;  %1486 = vmatprep.subr.mxu0 %v1626_v0 }
  0x8d   :  { %1476 = vmatpush3.msra.mxu1 %v1876_v13  ;;  %1487 = vmatpush3.msra.mxu0 %v735_v8 }
  0x8e   :  { %1477 = vmatprep.subr.mxu1 %v1626_v0  ;;  %1488 = vmatprep.subr.mxu0 %v1626_v0 }
  0x8f   :  { %1478 = vmatpush3.msra.mxu1 %v1886_v17  ;;  %1489 = vmatpush3.msra.mxu0 %v742_v14 }
  0x90   :  { %1479 = vmatprep.subr.mxu1 %v1626_v0  ;;  %1490 = vmatprep.subr.mxu0 %v1626_v0 }
  0x91   :  { %1480 = vmatpush3.msra.mxu1 %v1902_v22  ;;  %1491 = vmatpush3.msra.mxu0 %v749_v11  ;;  %v1187_v11 = vld [vmem:[%s2072_s4] ss:$0 sm:$0xff] }
  0x92   :  { %1481 = vmatprep.subr.mxu1 %v1626_v0  ;;  %1492 = vmatprep.subr.mxu0 %v1626_v0 }
  0x93   :  { %1482 = vmatpush3.msra.mxu1 %v1914_v24  ;;  %1483 = vmatprep.mubr.msk.f32.mxu1 %vm1627_vm0, %v1626_v0 }
  0x94   :  { %1493 = vmatpush3.msra.mxu0 %v756_v27  ;;  %1484 = vmatmul.mubr.f32.vlgmr.msra.gmra.mxu1 %v708_v28 }
  0x95   :  { %1494 = vmatprep.subr.mxu0 %v1626_v0  ;;  %1505 = vmatprep.subr.mxu1 %v1626_v0 }
  0x96   :  { %1495 = vmatpush3.msra.mxu0 %v763_v31  ;;  %1506 = vmatpush3.msra.mxu1 %v1832_v58 }
  0x97   :  { %1496 = vmatprep.subr.mxu0 %v1626_v0  ;;  %1507 = vmatprep.subr.mxu1 %v1626_v0 }
  0x98   :  { %1497 = vmatpush3.msra.mxu0 %v770_v35  ;;  %1508 = vmatpush3.msra.mxu1 %v1839_v61 }
  0x99   :  { %1498 = vmatprep.subr.mxu0 %v1626_v0  ;;  %1509 = vmatprep.subr.mxu1 %v1626_v0 }
  0x9a   :  { %1499 = vmatpush3.msra.mxu0 %v777_v37  ;;  %1510 = vmatpush3.msra.mxu1 %v1850_v1 }
  0x9b   :  { %1500 = vmatprep.subr.mxu0 %v1626_v0  ;;  %1511 = vmatprep.subr.mxu1 %v1626_v0 }
  0x9c   :  { %1501 = vmatpush3.msra.mxu0 %v784_v41  ;;  %1502 = vmatprep.mubr.msk.f32.mxu0 %vm1627_vm0, %v1626_v0 }
  0x9d   :  { %1512 = vmatpush3.msra.mxu1 %v1864_v7  ;;  %1503 = vmatmul.mubr.f32.vlgmr.msra.gmra.mxu0 %v1860_v5 }
  0x9e   :  { %1513 = vmatprep.subr.mxu1 %v1626_v0  ;;  %1521 = vmatprep.mubr.msk.f32.mxu1 %vm1627_vm0, %v1626_v0 }
  0x9f   :  { %1514 = vmatpush3.msra.mxu1 %v1876_v13 }
  0xa0   :  { %1515 = vmatprep.subr.mxu1 %v1626_v0 }
  0xa1   :  { %1516 = vmatpush3.msra.mxu1 %v1886_v17 }
  0xa2   :  { %1517 = vmatprep.subr.mxu1 %v1626_v0 }
  0xa3   :  { %1518 = vmatpush3.msra.mxu1 %v1902_v22 }
  0xa4   :  { %1519 = vmatprep.subr.mxu1 %v1626_v0 }
  0xa5   :  { %1520 = vmatpush3.msra.mxu1 %v1914_v24 }
  0xa6   :  { %1522 = vmatmul.mubr.f32.vlgmr.msra.gmra.mxu1 %v1860_v5 }
 0x105   :  { %v172_v48 = vpop.f32.mrf.mxu0 }
 0x107   :  { %v1314_v49 = vpop.f32.mrf.mxu0 }
 0x10c   :  { %v283_v50 = vpop.f32.mrf.mxu1 }
 0x10d   :  { %v284_v51 = vadd.f32 %v283_v50, %v172_v48 }
 0x10e   :  { %v1333_v52 = vpop.f32.mrf.mxu1 }
 0x115   :  { %v371_v53 = vpop.f32.mrf.mxu0 }
 0x116   :  { %v372_v4 = vadd.f32 %v371_v53, %v284_v51 }
 0x117   :  { %v1352_v54 = vpop.f32.mrf.mxu0 }
 0x11e   :  { %v452_v55 = vpop.f32.mrf.mxu1 }
 0x11f   :  { %v453_v7 = vadd.f32 %v452_v55, %v372_v4 }
 0x120   :  { %v1371_v56 = vpop.f32.mrf.mxu1 }
 0x127   :  { %v547_v57 = vpop.f32.mrf.mxu0 }
 0x128   :  { %v548_v6 = vadd.f32 %v547_v57, %v453_v7 }
 0x129   :  { %v1390_v58 = vpop.f32.mrf.mxu0 }
 0x130   :  { %v626_v59 = vpop.f32.mrf.mxu1 }
 0x131   :  { %v627_v8 = vadd.f32 %v626_v59, %v548_v6 }
 0x132   :  { %v1409_v60 = vpop.f32.mrf.mxu1 }
 0x139   :  { %v712_v61 = vpop.f32.mrf.mxu0 }
 0x13a   :  { %v713_v9 = vadd.f32 %v712_v61, %v627_v8 }
 0x13b   :  { %v1428_v62 = vpop.f32.mrf.mxu0 }
 0x142   :  { %v823_v0 = vpop.f32.mrf.mxu1 }
 0x143   :  { %v824_v14 = vadd.f32 %v823_v0, %v713_v9 }
 0x144   :  { %v1447_v63 = vpop.f32.mrf.mxu1 }
 0x14b   :  { %v911_v1 = vpop.f32.mrf.mxu0 }
 0x14c   :  { %v912_v16 = vadd.f32 %v911_v1, %v824_v14 }
 0x14d   :  { %v1466_v2 = vpop.f32.mrf.mxu0 }
 0x154   :  { %v992_v3 = vpop.f32.mrf.mxu1 }
 0x155   :  { %v993_v17 = vadd.f32 %v992_v3, %v912_v16 }
 0x156   :  { %v1485_v5 = vpop.f32.mrf.mxu1 }
 0x15d   :  { %v1087_v13 = vpop.f32.mrf.mxu0 }
 0x15e   :  { %v1088_v10 = vadd.f32 %v1087_v13, %v993_v17 }
 0x15f   :  { %v1504_v15 = vpop.f32.mrf.mxu0 }
 0x166   :  { %v1166_v18 = vpop.f32.mrf.mxu1 }
 0x167   :  { %v1167_v20 = vadd.f32 %v1166_v18, %v1088_v10 }
 0x168   :  { %v1523_v21 = vpop.f32.mrf.mxu1 }
 0x169   :  { %v1177_v22 = vadd.f32 %v1187_v11, %v1167_v20 }
 0x16b   :  { %1532 = vtanh.f32 %v1177_v22 }
 0x178   :  { %v1533_v23 = vpop.eup %1532 }
 0x179   :  { %1179 = vst [vmem:[%s2073_s5] sm:$0xff] %v1533_v23 }
 0x17a   :  { %1184 = vsyncpa [#allocation3], 1 }
 0x17b   :  { %1185 = vsyncpa [#allocation5], 1 }
 0x17c   :  { %1186 = vsyncpa [#allocation8], 1 }

</bundles_post_ra>
